<compile_context>
chip_gen: v6e
topology: v6e:2x2x1
jax: 0.10.0
libtpu: 0.0.40
codegen_flags: <defaults>
</compile_context>

<pallas_src>
import functools
from typing import NamedTuple

import jax
import jax.numpy as jnp
from jax.experimental import pallas as pl
from jax.experimental.pallas import tpu as pltpu

HIGHEST = jax.lax.Precision.HIGHEST


class EmbedParams(NamedTuple):
    """Per-weight-set constants consumed by the kernel (precompute once)."""
    fusedT: jax.Array   # (30, F) with F = 2*num_samples + num_nodes
    b1: jax.Array       # (30, 1) float32
    w2: jax.Array       # (1, 30) float32
    b2: jax.Array       # (1,)    float32


def prepare_embed_params(samp_tab, node_tab, w1, b1, w2, b2,
                         table_dtype=jnp.float32) -> EmbedParams:
    """Fold the embedding tables into linear_1 once (algebraically exact).

    lookup-then-matmul == matmul-then-lookup, and concat-then-matmul is the sum
    of per-block partials, so
        fused = [samp_tab @ W1a ; samp_tab @ W1b ; node_tab @ W1c]   # (F, 30)
    and layer 1 of the model becomes  multi_hot @ fused  (one MXU matmul).
    """
    _, sd = samp_tab.shape
    H = w1.shape[0]
    w1_t = w1.T.astype(jnp.float32)                      # (2*sd + nd, 30)
    fused = jnp.concatenate(
        [jnp.dot(samp_tab.astype(jnp.float32), w1_t[:sd], precision=HIGHEST),
         jnp.dot(samp_tab.astype(jnp.float32), w1_t[sd:2 * sd], precision=HIGHEST),
         jnp.dot(node_tab.astype(jnp.float32), w1_t[2 * sd:], precision=HIGHEST)],
        axis=0)                                          # (F, 30)
    return EmbedParams(
        fusedT=fused.T.astype(table_dtype),              # (30, F)
        b1=b1.reshape(H, 1).astype(jnp.float32),
        w2=w2.reshape(1, H).astype(jnp.float32),
        b2=b2.reshape(1).astype(jnp.float32),
    )


def embed_mlp_kernel(idx_ref, fusedT_ref, b1_ref, w2_ref, b2_ref, out_ref, *,
                     num_samples):
    """One batch tile: (3, TB) int32 indices -> (1, TB) sigmoid outputs."""
    F = fusedT_ref.shape[1]
    ns = num_samples
    nn_ = F - 2 * ns
    TB = idx_ref.shape[1]
    mm_dtype = fusedT_ref.dtype

    # Per-range one-hots written into disjoint row blocks of the (F, TB) MXU
    # operand: 2 compares over an (NS, TB) iota + 1 over an (NN, TB) iota
    # (= F*TB compare elements total vs 3*F*TB + ORs for a fused-iota build).
    # NOTE: out-of-range / negative indices silently select a zero embedding
    # here; PyTorch nn.Embedding would raise on malformed input instead.
    iota_s = jax.lax.broadcasted_iota(jnp.int32, (ns, TB), 0)
    iota_n = jax.lax.broadcasted_iota(jnp.int32, (nn_, TB), 0)
    hot_a = (iota_s == idx_ref[0:1, :]).astype(mm_dtype)        # (NS, TB)
    hot_b = (iota_s == idx_ref[1:2, :]).astype(mm_dtype)        # (NS, TB)
    hot_n = (iota_n == idx_ref[2:3, :]).astype(mm_dtype)        # (NN, TB)
    multi_hot = jnp.concatenate([hot_a, hot_b, hot_n], axis=0)  # (F, TB)

    # TODO(synk): for production-scale F (thousands of fused rows) replace the
    # one-hot matmul with a lane gather on the VMEM-resident fusedT (or tile F
    # as an "arbitrary" reduction axis); mask build + matmul scale linearly in F.

    # Layer 1: single MXU matmul on the folded table, bias broadcast over lanes.
    h = jnp.dot(fusedT_ref[...], multi_hot,
                preferred_element_type=jnp.float32) + b1_ref[...]   # (30, TB)
    h = jnp.maximum(h, 0.0)                                         # relu (VPU)

    # Layer 2: (1,30) @ (30,TB) -> lane-dense (1,TB); sigmoid on the EUP.
    logits = jnp.dot(w2_ref[...], h,
                     preferred_element_type=jnp.float32) + b2_ref[0]
    out_ref[...] = jax.nn.sigmoid(logits)


def _choose_tiles(batch, tb):
    """Lane-dense batch tiling with an even tile count (feeds both v7x TCs)."""
    tb = max(128, (tb // 128) * 128)
    b128 = 128 * pl.cdiv(batch, 128)
    n_tiles = max(2, 2 * pl.cdiv(pl.cdiv(b128, tb), 2))    # >= 2 and even
    tb_eff = 128 * pl.cdiv(pl.cdiv(batch, n_tiles), 128)   # per-tile lanes
    return tb_eff, n_tiles, tb_eff * n_tiles


def _vmem_limit_bytes(H, F, tb_eff, table_bytes, single_buffer_residents):
    res_bufs = 1 if single_buffer_residents else 2
    resident = res_bufs * (H * F * table_bytes + 2 * H * 4 + 4)
    per_step = (2 * 3 * tb_eff * 4            # idx tile (double-buffered)
                + 2 * 1 * tb_eff * 4          # out tile (double-buffered)
                + F * tb_eff * table_bytes    # multi-hot MXU operand
                + 2 * H * tb_eff * 4)         # h / logits temporaries
    est = resident + per_step
    # 2x headroom, floored at the 32 MiB v6e/v7x scoped default (v5e's default
    # is only 16 MiB), capped at v7x's 64 MiB physical VMEM.
    return int(min(max(2 * est, 32 << 20), 64 << 20))


@functools.partial(
    jax.jit, static_argnames=("num_samples", "tb", "single_buffer_residents"))
def embed_model_forward(sample, params: EmbedParams, *, num_samples,
                        tb=4096, single_buffer_residents=True):
    """sample: (B, 3) integer array -> (B, 1) float32 sigmoid scores."""
    B = sample.shape[0]
    H, F = params.fusedT.shape
    table_bytes = params.fusedT.dtype.itemsize

    # Batch-in-lanes index stream (no lane padding of a (B, 3) layout).
    idx = sample.astype(jnp.int32).T                         # (3, B)
    tb_eff, n_tiles, bp = _choose_tiles(B, tb)
    if bp != B:
        # Padded columns reuse index 0 (a valid row) and are sliced off below.
        idx = jnp.pad(idx, ((0, 0), (0, bp - B)))

    resident = (dict(pipeline_mode=pl.Buffered(buffer_count=1))
                if single_buffer_residents else {})

    out = pl.pallas_call(
        functools.partial(embed_mlp_kernel, num_samples=num_samples),
        out_shape=jax.ShapeDtypeStruct((1, bp), jnp.float32),
        grid=(n_tiles,),
        in_specs=[
            pl.BlockSpec((3, tb_eff), lambda i: (0, i)),          # index stream
            pl.BlockSpec((H, F), lambda i: (0, 0), **resident),   # fused table
            pl.BlockSpec((H, 1), lambda i: (0, 0), **resident),   # b1
            pl.BlockSpec((1, H), lambda i: (0, 0), **resident),   # w2
            pl.BlockSpec(memory_space=pltpu.MemorySpace.SMEM),    # b2 scalar
        ],
        out_specs=pl.BlockSpec((1, tb_eff), lambda i: (0, i)),
        compiler_params=pltpu.CompilerParams(
            dimension_semantics=("parallel",),                    # v7x 2-TC sharding
            vmem_limit_bytes=_vmem_limit_bytes(
                H, F, tb_eff, table_bytes, single_buffer_residents)),
    )(idx, params.fusedT, params.b1, params.w2, params.b2)

    return out[0, :B].reshape(B, 1)


def _reference_forward(sample, samp_tab, node_tab, w1, b1, w2, b2):
    """Plain-JAX reference mirroring the PyTorch forward exactly."""
    e1 = samp_tab[sample[:, 0]]
    e2 = samp_tab[sample[:, 1]]
    en = node_tab[sample[:, 2]]
    concat = jnp.concatenate([e1, e2, en], axis=-1)
    h = jnp.maximum(jnp.dot(concat, w1.T, precision=HIGHEST) + b1, 0.0)
    return jax.nn.sigmoid(jnp.dot(h, w2.T, precision=HIGHEST) + b2)


if __name__ == "__main__":
    # Small, deterministic synthetic setup consistent with the module.
    num_samples = 16
    num_nodes = 32
    samples_embedding_dim = 7
    nodes_embedding_dim = 50
    hidden = 30
    in_dim = 2 * samples_embedding_dim + nodes_embedding_dim  # 64
    B = 8

    key = jax.random.PRNGKey(0)
    k_se, k_ne, k_w1, k_b1, k_w2, k_b2, k_idx = jax.random.split(key, 7)

    # kaiming_uniform-like init for embedding tables (bound = sqrt(6 / fan_in)).
    se_bound = (6.0 / samples_embedding_dim) ** 0.5
    ne_bound = (6.0 / nodes_embedding_dim) ** 0.5
    samp_tab = jax.random.uniform(
        k_se, (num_samples, samples_embedding_dim), jnp.float32, -se_bound, se_bound)
    node_tab = jax.random.uniform(
        k_ne, (num_nodes, nodes_embedding_dim), jnp.float32, -ne_bound, ne_bound)

    # xavier_normal init for linear weights (torch layout: (out, in)).
    w1_std = (2.0 / (in_dim + hidden)) ** 0.5
    w2_std = (2.0 / (hidden + 1)) ** 0.5
    w1 = w1_std * jax.random.normal(k_w1, (hidden, in_dim), jnp.float32)
    w2 = w2_std * jax.random.normal(k_w2, (1, hidden), jnp.float32)
    b1 = 0.01 * jax.random.normal(k_b1, (hidden,), jnp.float32)
    b2 = 0.01 * jax.random.normal(k_b2, (1,), jnp.float32)

    # sample: (B, 3) int32 = [sample_1_idx, sample_2_idx, node_idx]
    s1 = jax.random.randint(k_idx, (B, 1), 0, num_samples, jnp.int32)
    s2 = jax.random.randint(jax.random.fold_in(k_idx, 1), (B, 1), 0, num_samples, jnp.int32)
    nd = jax.random.randint(jax.random.fold_in(k_idx, 2), (B, 1), 0, num_nodes, jnp.int32)
    sample = jnp.concatenate([s1, s2, nd], axis=1)

    ref = _reference_forward(sample, samp_tab, node_tab, w1, b1, w2, b2)

    # One-time table fold (per weight set), hoisted out of the per-call path.
    params_f32 = prepare_embed_params(samp_tab, node_tab, w1, b1, w2, b2)

    single_buffer = True
    try:
        out = embed_model_forward(sample, params_f32, num_samples=num_samples,
                                  single_buffer_residents=True)
        out = jax.block_until_ready(out)
    except Exception:
        # This jax build rejected pl.Buffered(1) single-buffering of the
        # resident operands; fall back to default double-buffering.
        single_buffer = False
        out = embed_model_forward(sample, params_f32, num_samples=num_samples,
                                  single_buffer_residents=False)
        out = jax.block_until_ready(out)

    assert out.shape == (B, 1)
    assert jnp.allclose(out, ref, atol=1e-5, rtol=1e-5), (out, ref)

    # Optional bf16 folded table (perf-review item): the 0/1 multi-hot stays
    # exact, only the folded weights round -> looser tolerance vs f32 reference.
    params_bf16 = prepare_embed_params(samp_tab, node_tab, w1, b1, w2, b2,
                                       table_dtype=jnp.bfloat16)
    out_bf16 = embed_model_forward(sample, params_bf16, num_samples=num_samples,
                                   single_buffer_residents=single_buffer)
    out_bf16 = jax.block_until_ready(out_bf16)
    assert out_bf16.shape == (B, 1)
    assert jnp.allclose(out_bf16, ref, atol=1e-2, rtol=1e-2), (out_bf16, ref)

    print("KERNEL_OK")
</pallas_src>

<mosaic_0001>
module attributes {stable_mosaic.version = 11 : i64} {
  func.func @embed_mlp_kernel(%arg0: i32, %arg1: memref<3x128xi32, #tpu.memory_space<vmem>>, %arg2: memref<30x64xf32, #tpu.memory_space<vmem>>, %arg3: memref<30x1xf32, #tpu.memory_space<vmem>>, %arg4: memref<1x30xf32, #tpu.memory_space<vmem>>, %arg5: memref<1xf32, #tpu.memory_space<smem>>, %arg6: memref<1x128xf32, #tpu.memory_space<vmem>>) attributes {dimension_semantics = [#tpu.dimension_semantics<parallel>], iteration_bounds = array<i64: 2>, scalar_prefetch = 0 : i64, scratch_operands = 0 : i64, tpu.core_type = #tpu.core_type<tc>, window_params = [{transform_indices = @transform_0, window_bounds = array<i64: 3, 128>}, {pipeline_mode = #tpu.pipeline_mode<synchronous>, transform_indices = @transform_1, window_bounds = array<i64: 30, 64>}, {pipeline_mode = #tpu.pipeline_mode<synchronous>, transform_indices = @transform_2, window_bounds = array<i64: 30, 1>}, {pipeline_mode = #tpu.pipeline_mode<synchronous>, transform_indices = @transform_3, window_bounds = array<i64: 1, 30>}, {transform_indices = @transform_4, window_bounds = array<i64: 1>}, {transform_indices = @transform_5, window_bounds = array<i64: 1, 128>}]} {
    %0 = tpu.iota {dimensions = array<i32: 0>} : vector<16x128xi32>
    %1 = tpu.iota {dimensions = array<i32: 0>} : vector<32x128xi32>
    %c0 = arith.constant 0 : index
    %c0_0 = arith.constant 0 : index
    %2 = vector.load %arg1[%c0, %c0_0] : memref<3x128xi32, #tpu.memory_space<vmem>>, vector<1x128xi32>
    %3 = vector.broadcast %2 : vector<1x128xi32> to vector<16x128xi32>
    %4 = arith.cmpi eq, %0, %3 : vector<16x128xi32>
    %5 = arith.extui %4 : vector<16x128xi1> to vector<16x128xi32>
    %6 = arith.sitofp %5 : vector<16x128xi32> to vector<16x128xf32>
    %c1 = arith.constant 1 : index
    %c0_1 = arith.constant 0 : index
    %7 = vector.load %arg1[%c1, %c0_1] : memref<3x128xi32, #tpu.memory_space<vmem>>, vector<1x128xi32>
    %8 = vector.broadcast %7 : vector<1x128xi32> to vector<16x128xi32>
    %9 = arith.cmpi eq, %0, %8 : vector<16x128xi32>
    %10 = arith.extui %9 : vector<16x128xi1> to vector<16x128xi32>
    %11 = arith.sitofp %10 : vector<16x128xi32> to vector<16x128xf32>
    %c2 = arith.constant 2 : index
    %c0_2 = arith.constant 0 : index
    %12 = vector.load %arg1[%c2, %c0_2] : memref<3x128xi32, #tpu.memory_space<vmem>>, vector<1x128xi32>
    %13 = vector.broadcast %12 : vector<1x128xi32> to vector<32x128xi32>
    %14 = arith.cmpi eq, %1, %13 : vector<32x128xi32>
    %15 = arith.extui %14 : vector<32x128xi1> to vector<32x128xi32>
    %16 = arith.sitofp %15 : vector<32x128xi32> to vector<32x128xf32>
    %17 = tpu.concatenate %6, %11, %16 in 0 : vector<16x128xf32>, vector<16x128xf32>, vector<32x128xf32> -> vector<64x128xf32>
    %c0_3 = arith.constant 0 : index
    %c0_4 = arith.constant 0 : index
    %18 = vector.load %arg2[%c0_3, %c0_4] : memref<30x64xf32, #tpu.memory_space<vmem>>, vector<30x64xf32>
    %cst = arith.constant dense<0.000000e+00> : vector<30x128xf32>
    %19 = tpu.matmul %18, %17, %cst {dimension_numbers = #tpu.dot_dimension_numbers<[1], [0], [0], [1], [0, 0, 1, 1], [], []>} : vector<30x64xf32>, vector<64x128xf32>, vector<30x128xf32> -> vector<30x128xf32>
    %c0_5 = arith.constant 0 : index
    %c0_6 = arith.constant 0 : index
    %20 = vector.load %arg3[%c0_5, %c0_6] : memref<30x1xf32, #tpu.memory_space<vmem>>, vector<30x1xf32>
    %21 = vector.broadcast %20 : vector<30x1xf32> to vector<30x128xf32>
    %22 = arith.addf %19, %21 : vector<30x128xf32>
    %cst_7 = arith.constant 0.000000e+00 : f32
    %23 = vector.broadcast %cst_7 : f32 to vector<30x128xf32>
    %24 = arith.maximumf %22, %23 : vector<30x128xf32>
    %c0_8 = arith.constant 0 : index
    %c0_9 = arith.constant 0 : index
    %25 = vector.load %arg4[%c0_8, %c0_9] : memref<1x30xf32, #tpu.memory_space<vmem>>, vector<1x30xf32>
    %cst_10 = arith.constant dense<0.000000e+00> : vector<1x128xf32>
    %26 = tpu.matmul %25, %24, %cst_10 {dimension_numbers = #tpu.dot_dimension_numbers<[1], [0], [0], [1], [0, 0, 1, 1], [], []>} : vector<1x30xf32>, vector<30x128xf32>, vector<1x128xf32> -> vector<1x128xf32>
    %c0_11 = arith.constant 0 : index
    %27 = memref.load %arg5[%c0_11] : memref<1xf32, #tpu.memory_space<smem>>
    %28 = vector.broadcast %27 : f32 to vector<1x128xf32>
    %29 = arith.addf %26, %28 : vector<1x128xf32>
    %30 = arith.negf %29 : vector<1x128xf32>
    %31 = math.exp %30 : vector<1x128xf32>
    %cst_12 = arith.constant 1.000000e+00 : f32
    %32 = vector.broadcast %cst_12 : f32 to vector<1x128xf32>
    %33 = arith.addf %32, %31 : vector<1x128xf32>
    %34 = arith.divf %32, %33 : vector<1x128xf32>
    %c0_13 = arith.constant 0 : index
    %c0_14 = arith.constant 0 : index
    %35 = vector.load %arg6[%c0_13, %c0_14] : memref<1x128xf32, #tpu.memory_space<vmem>>, vector<1x128xf32>
    tpu.vector_store %arg6[%c0_13, %c0_14], %34 {strides = array<i32>} : memref<1x128xf32, #tpu.memory_space<vmem>>, vector<1x128xf32>,
    return
  }
  func.func @transform_0(%arg0: i32) -> (i32, i32) {
    %c0_i32 = arith.constant 0 : i32
    %c0_i32_0 = arith.constant 0 : i32
    return %c0_i32, %arg0 : i32, i32
  }
  func.func @transform_1(%arg0: i32) -> (i32, i32) {
    %c0_i32 = arith.constant 0 : i32
    %c0_i32_0 = arith.constant 0 : i32
    %c0_i32_1 = arith.constant 0 : i32
    return %c0_i32, %c0_i32_0 : i32, i32
  }
  func.func @transform_2(%arg0: i32) -> (i32, i32) {
    %c0_i32 = arith.constant 0 : i32
    %c0_i32_0 = arith.constant 0 : i32
    %c0_i32_1 = arith.constant 0 : i32
    return %c0_i32, %c0_i32_0 : i32, i32
  }
  func.func @transform_3(%arg0: i32) -> (i32, i32) {
    %c0_i32 = arith.constant 0 : i32
    %c0_i32_0 = arith.constant 0 : i32
    %c0_i32_1 = arith.constant 0 : i32
    return %c0_i32, %c0_i32_0 : i32, i32
  }
  func.func @transform_4(%arg0: i32) -> i32 {
    %c0_i32 = arith.constant 0 : i32
    %c0_i32_0 = arith.constant 0 : i32
    return %c0_i32 : i32
  }
  func.func @transform_5(%arg0: i32) -> (i32, i32) {
    %c0_i32 = arith.constant 0 : i32
    %c0_i32_0 = arith.constant 0 : i32
    return %c0_i32, %arg0 : i32, i32
  }
}

module attributes {stable_mosaic.version = 11 : i64} {
  func.func @embed_mlp_kernel(%arg0: i32, %arg1: memref<3x128xi32, #tpu.memory_space<vmem>>, %arg2: memref<30x64xf32, #tpu.memory_space<vmem>>, %arg3: memref<30x1xf32, #tpu.memory_space<vmem>>, %arg4: memref<1x30xf32, #tpu.memory_space<vmem>>, %arg5: memref<1xf32, #tpu.memory_space<smem>>, %arg6: memref<1x128xf32, #tpu.memory_space<vmem>>) attributes {dimension_semantics = [#tpu.dimension_semantics<parallel>], iteration_bounds = array<i64: 2>, scalar_prefetch = 0 : i64, scratch_operands = 0 : i64, tpu.core_type = #tpu.core_type<tc>, window_params = [{transform_indices = @transform_0, window_bounds = array<i64: 3, 128>}, {pipeline_mode = #tpu.pipeline_mode<synchronous>, transform_indices = @transform_1, window_bounds = array<i64: 30, 64>}, {pipeline_mode = #tpu.pipeline_mode<synchronous>, transform_indices = @transform_2, window_bounds = array<i64: 30, 1>}, {pipeline_mode = #tpu.pipeline_mode<synchronous>, transform_indices = @transform_3, window_bounds = array<i64: 1, 30>}, {transform_indices = @transform_4, window_bounds = array<i64: 1>}, {transform_indices = @transform_5, window_bounds = array<i64: 1, 128>}]} {
    %0 = tpu.iota {dimensions = array<i32: 0>} : vector<16x128xi32>
    %1 = tpu.iota {dimensions = array<i32: 0>} : vector<32x128xi32>
    %c0 = arith.constant 0 : index
    %c0_0 = arith.constant 0 : index
    %2 = vector.load %arg1[%c0, %c0_0] : memref<3x128xi32, #tpu.memory_space<vmem>>, vector<1x128xi32>
    %3 = vector.broadcast %2 : vector<1x128xi32> to vector<16x128xi32>
    %4 = arith.cmpi eq, %0, %3 : vector<16x128xi32>
    %5 = arith.extui %4 : vector<16x128xi1> to vector<16x128xi32>
    %6 = arith.sitofp %5 : vector<16x128xi32> to vector<16x128xf32>
    %c1 = arith.constant 1 : index
    %c0_1 = arith.constant 0 : index
    %7 = vector.load %arg1[%c1, %c0_1] : memref<3x128xi32, #tpu.memory_space<vmem>>, vector<1x128xi32>
    %8 = vector.broadcast %7 : vector<1x128xi32> to vector<16x128xi32>
    %9 = arith.cmpi eq, %0, %8 : vector<16x128xi32>
    %10 = arith.extui %9 : vector<16x128xi1> to vector<16x128xi32>
    %11 = arith.sitofp %10 : vector<16x128xi32> to vector<16x128xf32>
    %c2 = arith.constant 2 : index
    %c0_2 = arith.constant 0 : index
    %12 = vector.load %arg1[%c2, %c0_2] : memref<3x128xi32, #tpu.memory_space<vmem>>, vector<1x128xi32>
    %13 = vector.broadcast %12 : vector<1x128xi32> to vector<32x128xi32>
    %14 = arith.cmpi eq, %1, %13 : vector<32x128xi32>
    %15 = arith.extui %14 : vector<32x128xi1> to vector<32x128xi32>
    %16 = arith.sitofp %15 : vector<32x128xi32> to vector<32x128xf32>
    %17 = tpu.concatenate %6, %11, %16 in 0 : vector<16x128xf32>, vector<16x128xf32>, vector<32x128xf32> -> vector<64x128xf32>
    %c0_3 = arith.constant 0 : index
    %c0_4 = arith.constant 0 : index
    %18 = vector.load %arg2[%c0_3, %c0_4] : memref<30x64xf32, #tpu.memory_space<vmem>>, vector<30x64xf32>
    %cst = arith.constant dense<0.000000e+00> : vector<30x128xf32>
    %19 = tpu.matmul %18, %17, %cst {dimension_numbers = #tpu.dot_dimension_numbers<[1], [0], [0], [1], [0, 0, 1, 1], [], []>} : vector<30x64xf32>, vector<64x128xf32>, vector<30x128xf32> -> vector<30x128xf32>
    %c0_5 = arith.constant 0 : index
    %c0_6 = arith.constant 0 : index
    %20 = vector.load %arg3[%c0_5, %c0_6] : memref<30x1xf32, #tpu.memory_space<vmem>>, vector<30x1xf32>
    %21 = vector.broadcast %20 : vector<30x1xf32> to vector<30x128xf32>
    %22 = arith.addf %19, %21 : vector<30x128xf32>
    %cst_7 = arith.constant 0.000000e+00 : f32
    %23 = vector.broadcast %cst_7 : f32 to vector<30x128xf32>
    %24 = arith.maximumf %22, %23 : vector<30x128xf32>
    %c0_8 = arith.constant 0 : index
    %c0_9 = arith.constant 0 : index
    %25 = vector.load %arg4[%c0_8, %c0_9] : memref<1x30xf32, #tpu.memory_space<vmem>>, vector<1x30xf32>
    %cst_10 = arith.constant dense<0.000000e+00> : vector<1x128xf32>
    %26 = tpu.matmul %25, %24, %cst_10 {dimension_numbers = #tpu.dot_dimension_numbers<[1], [0], [0], [1], [0, 0, 1, 1], [], []>} : vector<1x30xf32>, vector<30x128xf32>, vector<1x128xf32> -> vector<1x128xf32>
    %c0_11 = arith.constant 0 : index
    %27 = memref.load %arg5[%c0_11] : memref<1xf32, #tpu.memory_space<smem>>
    %28 = vector.broadcast %27 : f32 to vector<1x128xf32>
    %29 = arith.addf %26, %28 : vector<1x128xf32>
    %30 = arith.negf %29 : vector<1x128xf32>
    %31 = math.exp %30 : vector<1x128xf32>
    %cst_12 = arith.constant 1.000000e+00 : f32
    %32 = vector.broadcast %cst_12 : f32 to vector<1x128xf32>
    %33 = arith.addf %32, %31 : vector<1x128xf32>
    %34 = arith.divf %32, %33 : vector<1x128xf32>
    %c0_13 = arith.constant 0 : index
    %c0_14 = arith.constant 0 : index
    %35 = vector.load %arg6[%c0_13, %c0_14] : memref<1x128xf32, #tpu.memory_space<vmem>>, vector<1x128xf32>
    tpu.vector_store %arg6[%c0_13, %c0_14], %34 {strides = array<i32>} : memref<1x128xf32, #tpu.memory_space<vmem>>, vector<1x128xf32>,
    return
  }
  func.func @transform_0(%arg0: i32) -> (i32, i32) {
    %c0_i32 = arith.constant 0 : i32
    %c0_i32_0 = arith.constant 0 : i32
    return %c0_i32, %arg0 : i32, i32
  }
  func.func @transform_1(%arg0: i32) -> (i32, i32) {
    %c0_i32 = arith.constant 0 : i32
    %c0_i32_0 = arith.constant 0 : i32
    %c0_i32_1 = arith.constant 0 : i32
    return %c0_i32, %c0_i32_0 : i32, i32
  }
  func.func @transform_2(%arg0: i32) -> (i32, i32) {
    %c0_i32 = arith.constant 0 : i32
    %c0_i32_0 = arith.constant 0 : i32
    %c0_i32_1 = arith.constant 0 : i32
    return %c0_i32, %c0_i32_0 : i32, i32
  }
  func.func @transform_3(%arg0: i32) -> (i32, i32) {
    %c0_i32 = arith.constant 0 : i32
    %c0_i32_0 = arith.constant 0 : i32
    %c0_i32_1 = arith.constant 0 : i32
    return %c0_i32, %c0_i32_0 : i32, i32
  }
  func.func @transform_4(%arg0: i32) -> i32 {
    %c0_i32 = arith.constant 0 : i32
    %c0_i32_0 = arith.constant 0 : i32
    return %c0_i32 : i32
  }
  func.func @transform_5(%arg0: i32) -> (i32, i32) {
    %c0_i32 = arith.constant 0 : i32
    %c0_i32_0 = arith.constant 0 : i32
    return %c0_i32, %arg0 : i32, i32
  }
}

</mosaic_0001>

<bundles_post_ra>
// kernel: embed_model_forward.1
= control target key start
LH: loop header
LB: loop body
LE: loop exit
PB: predicated region body
PF: predicated region fallthrough
CT: control target
= control target key end

     0   :  { %s675_s20 = smov 0   ;;  %s727_s0 = inlined_call_operand.vmem [shape: s32[3,256], index: 0, kind: input, shape index: {}]   ;;  %s728_s1 = inlined_call_operand.vmem [shape: f32[30,64], index: 1, kind: input, shape index: {}]   ;;  %s729_s2 = inlined_call_operand.vmem [shape: f32[30,1], index: 2, kind: input, shape index: {}]   ;;  %s730_s3 = inlined_call_operand.vmem [shape: f32[1,30], index: 3, kind: input, shape index: {}]   ;;  %s731_s4 = inlined_call_operand.<no memory space> [shape: f32[1], index: 4, kind: input, shape index: {}]   ;;  %s732_s5 = inlined_call_operand.vmem [shape: f32[1,256], index: 5, kind: output, shape index: {}]  }
   0x1   :  { %10 = sst [smem:[#allocation2]] %s731_s4 }
   0x2 LB: > { %s528_s21 = sadd.s32 4294967295, %s636_s20   ;;  %p532_p0 = scmp.ge.s32.totalorder %s636_s20, 1  ;;  %s636_s20 = sphi %s675_s20, %s16_s20  }
   0x3   : > { %p187_p1 = scmp.lt.s32.totalorder %s636_s20, 3 }
   0x5   : > { %p188_p2 = pnand %p532_p0, %p187_p1 }
   0x6   : > { %p212_p3 = scmp.lt.s32.totalorder (!%p188_p2), %s528_s21, 1  ;;  %s394_s18 = sld [smem:[#allocation2]] (!%p188_p2) }
   0x7   : > { %191 = sbr.rel (%p188_p2) target bundleno = 471 (0x1d7), region = 40 }
   0xc   : > { %v219_v0 = vlaneseq  ;;  %v263_v1 = vld [vmem:[%s728_s1] sm:$0xff]  ;;  %vm291_vm0 = vcmask 523264   ;;  %v270_v2 = vld [vmem:[%s729_s2 + $0x18] sm:$0x3f]  ;;  %v268_v3 = vld [vmem:[%s729_s2 + $0x8] sm:$0xff]  ;;  %s734_s21 = smov (!%p212_p3, %s528_s21), 1  ;;  %v395_v36 = vstv %s394_s18 }
   0xd   : > { %595 = vmatprep.mubr.msk.f32.mxu0 %vm291_vm0, %v263_v1  ;;  %v638_v5 = vmov 0   ;;  %s533_s27 = sshll.u32 %s734_s21, 2  ;;  %v269_v8 = vld [vmem:[%s729_s2 + $0x10] sm:$0xff]  ;;  %v267_v11 = vld [vmem:[%s729_s2] sm:$0xff]  ;;  %v639_v12 = vmov 1.0   ;;  %v264_v15 = vld [vmem:[%s728_s1 + $0x8] sm:$0xff]  ;;  %s218_s23 = scalar_lea.vmem %s732_s5, %s734_s21 }
   0xe   : > { %v220_v4 = vshrl.u32 %v219_v0, 7  ;;  %625 = vset.pattern.permute.xlu1 %v638_v5  ;;  %624 = vset.pattern.permute.xlu0 %v638_v5  ;;  %s215_s7 = scalar_lea.vmem %s727_s0, %s533_s27  ;;  %v265_v16 = vld [vmem:[%s728_s1 + $0x10] sm:$0xff]  ;;  %v266_v17 = vld [vmem:[%s728_s1 + $0x18] sm:$0x3f]  ;;  %v640_v18 = vmov 0.0   ;;  %vm641_vm9 = vmmov 0  }
   0xf   : > { %288 = vperm.xlu0 %624, %v270_v2   ;;  %278 = vperm.xlu1 %625, %v268_v3   ;;  %v540_v10 = vld [vmem:[%s215_s7 + $0x2] ss:$0 sm:$0xff]  ;;  %v537_v13 = vld [vmem:[%s215_s7 + $0x1] ss:$0 sm:$0xff]  ;;  %v534_v14 = vld [vmem:[%s215_s7] ss:$0 sm:$0xff] }
  0x10   : > { %v223_v6 = vadd.s32 24, %v220_v4  ;;  %v222_v7 = vadd.s32 16, %v220_v4  ;;  %v221_v9 = vadd.s32 8, %v220_v4  ;;  %vm251_vm4 = vcmp.eq.s32.totalorder %v220_v4, %v540_v10  ;;  %601 = vmatprep.subr.mxu1 %v640_v18  ;;  %609 = vmatprep.mubr.msk.f32.mxu1 %vm641_vm9, %v640_v18  ;;  %v393_v35 = vld [vmem:[%s730_s3] sm:$0x1] }
  0x11   : > { %vm240_vm6 = vcmp.eq.s32.totalorder %v220_v4, %v537_v13  ;;  %vm229_vm8 = vcmp.eq.s32.totalorder %v220_v4, %v534_v14  ;;  %vm400_vm10 = vcmask 1045504   ;;  %vm396_vm11 = vcmask 244736  }
  0x12   : > { %vm254_vm1 = vcmp.eq.s32.totalorder %v223_v6, %v540_v10  ;;  %vm253_vm2 = vcmp.eq.s32.totalorder %v222_v7, %v540_v10  ;;  %vm252_vm3 = vcmp.eq.s32.totalorder %v221_v9, %v540_v10  ;;  %vm241_vm5 = vcmp.eq.s32.totalorder %v221_v9, %v537_v13 }
  0x13   : > { %283 = vperm.xlu0 %624, %v269_v8   ;;  %579 = vmatprep.subr.msk.mxu0 %vm254_vm1, %v639_v12  ;;  %vm230_vm7 = vcmp.eq.s32.totalorder %v221_v9, %v534_v14 }
  0x14   : > { %580 = vmatpush3.msk.msra.mxu0 %vm254_vm1, %v639_v12  ;;  %273 = vperm.xlu1 %625, %v267_v11  }
  0x15   : > { %581 = vmatprep.subr.msk.mxu0 %vm253_vm2, %v639_v12 }
  0x16   : > { %582 = vmatpush3.msk.msra.mxu0 %vm253_vm2, %v639_v12 }
  0x17   : > { %583 = vmatprep.subr.msk.mxu0 %vm252_vm3, %v639_v12 }
  0x18   : > { %584 = vmatpush3.msk.msra.mxu0 %vm252_vm3, %v639_v12 }
  0x19   : > { %585 = vmatprep.subr.msk.mxu0 %vm251_vm4, %v639_v12 }
  0x1a   : > { %586 = vmatpush3.msk.msra.mxu0 %vm251_vm4, %v639_v12 }
  0x1b   : > { %587 = vmatprep.subr.msk.mxu0 %vm241_vm5, %v639_v12 }
  0x1c   : > { %588 = vmatpush3.msk.msra.mxu0 %vm241_vm5, %v639_v12 }
  0x1d   : > { %589 = vmatprep.subr.msk.mxu0 %vm240_vm6, %v639_v12 }
  0x1e   : > { %590 = vmatpush3.msk.msra.mxu0 %vm240_vm6, %v639_v12 }
  0x1f   : > { %591 = vmatprep.subr.msk.mxu0 %vm230_vm7, %v639_v12 }
  0x20   : > { %592 = vmatpush3.msk.msra.mxu0 %vm230_vm7, %v639_v12 }
  0x21   : > { %593 = vmatprep.subr.msk.mxu0 %vm229_vm8, %v639_v12 }
  0x22   : > { %594 = vmatpush3.msk.msra.mxu0 %vm229_vm8, %v639_v12 }
  0x23   : > { %596 = vmatmul.mubr.msk.f32.vlgmr.msra.gmra.mxu0 %vm291_vm0, %v264_v15 }
  0x24   : > { %598 = vmatprep.mubr.msk.f32.mxu0 %vm291_vm0, %v265_v16 }
  0x27   : > { %599 = vmatmul.mubr.msk.f32.gmra.mxu0 %vm291_vm0, %v266_v17 }
  0x8a   : > { %v289_v19 = vpop.permute.xlu0 %288  ;;  %v279_v20 = vpop.permute.xlu1 %278 }
  0x8e   : > { %v284_v24 = vpop.permute.xlu0 %283 }
  0x8f   : > { %v274_v26 = vpop.permute.xlu1 %273 }
  0xe3   : > { %v597_v21 = vpop.f32.mrf.mxu0 }
  0xe4   : > { %v376_v28 = vadd.f32 %v597_v21, %v279_v20 }
  0xe5   : > { %v370_v22 = vpop.f32.mrf.mxu0 }
  0xe6   : > { %v371_v31 = vadd.f32 %v370_v22, %v274_v26  ;;  %v390_v33 = vmax.f32 %v376_v28, 0.0 }
  0xe7   : > { %v600_v23 = vpop.f32.mrf.mxu0 }
  0xe8   : > { %v386_v25 = vadd.f32 %v600_v23, %v289_v19  ;;  %v389_v34 = vmax.f32 %v371_v31, 0.0 }
  0xe9   : > { %v380_v27 = vpop.f32.mrf.mxu0 }
  0xea   : > { %v392_v29 = vmax.f32 %v386_v25, 0.0  ;;  %v381_v30 = vadd.f32 %v380_v27, %v284_v24 }
  0xec   : > { %v391_v32 = vmax.f32 %v381_v30, 0.0  ;;  %602 = vmatpush3.msk.msra.mxu1 %vm400_vm10, %v392_v29 }
  0xed   : > { %603 = vmatprep.subr.mxu1 %v640_v18 }
  0xee   : > { %604 = vmatpush3.msra.mxu1 %v391_v32 }
  0xef   : > { %605 = vmatprep.subr.mxu1 %v640_v18 }
  0xf0   : > { %606 = vmatpush3.msra.mxu1 %v390_v33 }
  0xf1   : > { %607 = vmatprep.subr.mxu1 %v640_v18 }
  0xf2   : > { %608 = vmatpush3.msra.mxu1 %v389_v34 }
  0xf3   : > { %610 = vmatmul.mubr.msk.f32.vlgmr.msra.gmra.mxu1 %vm396_vm11, %v393_v35 }
 0x1b3   : > { %v470_v37 = vpop.f32.mrf.mxu1 }
 0x1b4   : > { %v471_v38 = vadd.f32 %v470_v37, %v395_v36 }
 0x1b5   : > { %v611_v39 = vpop.f32.mrf.mxu1 }
 0x1b6   : > { %v559_v40 = vmul.f32 -1.442695, %v471_v38 }
 0x1b8   : > { %626 = vpow2.f32 %v559_v40 }
 0x1c5   : > { %v627_v41 = vpop.eup %626 }
 0x1c6   : > { %v477_v42 = vadd.f32 1.0, %v627_v41 }
 0x1c8   : > { %628 = vrcp.f32 %v477_v42 }
 0x1d5   : > { %v629_v43 = vpop.eup %628 }
 0x1d6   : > { %480 = vst [vmem:[%s218_s23] sm:$0x1] %v629_v43 }
 0x1d7 PF: > { %s16_s20 = sadd.s32 1, %s636_s20  }
 0x1d8   : > { %p13_p4 = scmp.ge.s32.totalorder %s16_s20, 4  }
 0x1da   :  { %15 = sbr.rel (!%p13_p4) target bundleno = 2 (0x2), region = 70 }

// kernel: embed_model_forward.1
= control target key start
LH: loop header
LB: loop body
LE: loop exit
PB: predicated region body
PF: predicated region fallthrough
CT: control target
= control target key end

     0   :  { %s675_s20 = smov 0   ;;  %s727_s0 = inlined_call_operand.vmem [shape: s32[3,256], index: 0, kind: input, shape index: {}]   ;;  %s728_s1 = inlined_call_operand.vmem [shape: f32[30,64], index: 1, kind: input, shape index: {}]   ;;  %s729_s2 = inlined_call_operand.vmem [shape: f32[30,1], index: 2, kind: input, shape index: {}]   ;;  %s730_s3 = inlined_call_operand.vmem [shape: f32[1,30], index: 3, kind: input, shape index: {}]   ;;  %s731_s4 = inlined_call_operand.<no memory space> [shape: f32[1], index: 4, kind: input, shape index: {}]   ;;  %s732_s5 = inlined_call_operand.vmem [shape: f32[1,256], index: 5, kind: output, shape index: {}]  }
   0x1   :  { %10 = sst [smem:[#allocation2]] %s731_s4 }
   0x2 LB: > { %s528_s21 = sadd.s32 4294967295, %s636_s20   ;;  %p532_p0 = scmp.ge.s32.totalorder %s636_s20, 1  ;;  %s636_s20 = sphi %s675_s20, %s16_s20  }
   0x3   : > { %p187_p1 = scmp.lt.s32.totalorder %s636_s20, 3 }
   0x5   : > { %p188_p2 = pnand %p532_p0, %p187_p1 }
   0x6   : > { %p212_p3 = scmp.lt.s32.totalorder (!%p188_p2), %s528_s21, 1  ;;  %s394_s18 = sld [smem:[#allocation2]] (!%p188_p2) }
   0x7   : > { %191 = sbr.rel (%p188_p2) target bundleno = 471 (0x1d7), region = 40 }
   0xc   : > { %v219_v0 = vlaneseq  ;;  %v263_v1 = vld [vmem:[%s728_s1] sm:$0xff]  ;;  %vm291_vm0 = vcmask 523264   ;;  %v270_v2 = vld [vmem:[%s729_s2 + $0x18] sm:$0x3f]  ;;  %v268_v3 = vld [vmem:[%s729_s2 + $0x8] sm:$0xff]  ;;  %s734_s21 = smov (!%p212_p3, %s528_s21), 1  ;;  %v395_v36 = vstv %s394_s18 }
   0xd   : > { %595 = vmatprep.mubr.msk.f32.mxu0 %vm291_vm0, %v263_v1  ;;  %v638_v5 = vmov 0   ;;  %s533_s27 = sshll.u32 %s734_s21, 2  ;;  %v269_v8 = vld [vmem:[%s729_s2 + $0x10] sm:$0xff]  ;;  %v267_v11 = vld [vmem:[%s729_s2] sm:$0xff]  ;;  %v639_v12 = vmov 1.0   ;;  %v264_v15 = vld [vmem:[%s728_s1 + $0x8] sm:$0xff]  ;;  %s218_s23 = scalar_lea.vmem %s732_s5, %s734_s21 }
   0xe   : > { %v220_v4 = vshrl.u32 %v219_v0, 7  ;;  %625 = vset.pattern.permute.xlu1 %v638_v5  ;;  %624 = vset.pattern.permute.xlu0 %v638_v5  ;;  %s215_s7 = scalar_lea.vmem %s727_s0, %s533_s27  ;;  %v265_v16 = vld [vmem:[%s728_s1 + $0x10] sm:$0xff]  ;;  %v266_v17 = vld [vmem:[%s728_s1 + $0x18] sm:$0x3f]  ;;  %v640_v18 = vmov 0.0   ;;  %vm641_vm9 = vmmov 0  }
   0xf   : > { %288 = vperm.xlu0 %624, %v270_v2   ;;  %278 = vperm.xlu1 %625, %v268_v3   ;;  %v540_v10 = vld [vmem:[%s215_s7 + $0x2] ss:$0 sm:$0xff]  ;;  %v537_v13 = vld [vmem:[%s215_s7 + $0x1] ss:$0 sm:$0xff]  ;;  %v534_v14 = vld [vmem:[%s215_s7] ss:$0 sm:$0xff] }
  0x10   : > { %v223_v6 = vadd.s32 24, %v220_v4  ;;  %v222_v7 = vadd.s32 16, %v220_v4  ;;  %v221_v9 = vadd.s32 8, %v220_v4  ;;  %vm251_vm4 = vcmp.eq.s32.totalorder %v220_v4, %v540_v10  ;;  %601 = vmatprep.subr.mxu1 %v640_v18  ;;  %609 = vmatprep.mubr.msk.f32.mxu1 %vm641_vm9, %v640_v18  ;;  %v393_v35 = vld [vmem:[%s730_s3] sm:$0x1] }
  0x11   : > { %vm240_vm6 = vcmp.eq.s32.totalorder %v220_v4, %v537_v13  ;;  %vm229_vm8 = vcmp.eq.s32.totalorder %v220_v4, %v534_v14  ;;  %vm400_vm10 = vcmask 1045504   ;;  %vm396_vm11 = vcmask 244736  }
  0x12   : > { %vm254_vm1 = vcmp.eq.s32.totalorder %v223_v6, %v540_v10  ;;  %vm253_vm2 = vcmp.eq.s32.totalorder %v222_v7, %v540_v10  ;;  %vm252_vm3 = vcmp.eq.s32.totalorder %v221_v9, %v540_v10  ;;  %vm241_vm5 = vcmp.eq.s32.totalorder %v221_v9, %v537_v13 }
  0x13   : > { %283 = vperm.xlu0 %624, %v269_v8   ;;  %579 = vmatprep.subr.msk.mxu0 %vm254_vm1, %v639_v12  ;;  %vm230_vm7 = vcmp.eq.s32.totalorder %v221_v9, %v534_v14 }
  0x14   : > { %580 = vmatpush3.msk.msra.mxu0 %vm254_vm1, %v639_v12  ;;  %273 = vperm.xlu1 %625, %v267_v11  }
  0x15   : > { %581 = vmatprep.subr.msk.mxu0 %vm253_vm2, %v639_v12 }
  0x16   : > { %582 = vmatpush3.msk.msra.mxu0 %vm253_vm2, %v639_v12 }
  0x17   : > { %583 = vmatprep.subr.msk.mxu0 %vm252_vm3, %v639_v12 }
  0x18   : > { %584 = vmatpush3.msk.msra.mxu0 %vm252_vm3, %v639_v12 }
  0x19   : > { %585 = vmatprep.subr.msk.mxu0 %vm251_vm4, %v639_v12 }
  0x1a   : > { %586 = vmatpush3.msk.msra.mxu0 %vm251_vm4, %v639_v12 }
  0x1b   : > { %587 = vmatprep.subr.msk.mxu0 %vm241_vm5, %v639_v12 }
  0x1c   : > { %588 = vmatpush3.msk.msra.mxu0 %vm241_vm5, %v639_v12 }
  0x1d   : > { %589 = vmatprep.subr.msk.mxu0 %vm240_vm6, %v639_v12 }
  0x1e   : > { %590 = vmatpush3.msk.msra.mxu0 %vm240_vm6, %v639_v12 }
  0x1f   : > { %591 = vmatprep.subr.msk.mxu0 %vm230_vm7, %v639_v12 }
  0x20   : > { %592 = vmatpush3.msk.msra.mxu0 %vm230_vm7, %v639_v12 }
  0x21   : > { %593 = vmatprep.subr.msk.mxu0 %vm229_vm8, %v639_v12 }
  0x22   : > { %594 = vmatpush3.msk.msra.mxu0 %vm229_vm8, %v639_v12 }
  0x23   : > { %596 = vmatmul.mubr.msk.f32.vlgmr.msra.gmra.mxu0 %vm291_vm0, %v264_v15 }
  0x24   : > { %598 = vmatprep.mubr.msk.f32.mxu0 %vm291_vm0, %v265_v16 }
  0x27   : > { %599 = vmatmul.mubr.msk.f32.gmra.mxu0 %vm291_vm0, %v266_v17 }
  0x8a   : > { %v289_v19 = vpop.permute.xlu0 %288  ;;  %v279_v20 = vpop.permute.xlu1 %278 }
  0x8e   : > { %v284_v24 = vpop.permute.xlu0 %283 }
  0x8f   : > { %v274_v26 = vpop.permute.xlu1 %273 }
  0xe3   : > { %v597_v21 = vpop.f32.mrf.mxu0 }
  0xe4   : > { %v376_v28 = vadd.f32 %v597_v21, %v279_v20 }
  0xe5   : > { %v370_v22 = vpop.f32.mrf.mxu0 }
  0xe6   : > { %v371_v31 = vadd.f32 %v370_v22, %v274_v26  ;;  %v390_v33 = vmax.f32 %v376_v28, 0.0 }
  0xe7   : > { %v600_v23 = vpop.f32.mrf.mxu0 }
  0xe8   : > { %v386_v25 = vadd.f32 %v600_v23, %v289_v19  ;;  %v389_v34 = vmax.f32 %v371_v31, 0.0 }
  0xe9   : > { %v380_v27 = vpop.f32.mrf.mxu0 }
  0xea   : > { %v392_v29 = vmax.f32 %v386_v25, 0.0  ;;  %v381_v30 = vadd.f32 %v380_v27, %v284_v24 }
  0xec   : > { %v391_v32 = vmax.f32 %v381_v30, 0.0  ;;  %602 = vmatpush3.msk.msra.mxu1 %vm400_vm10, %v392_v29 }
  0xed   : > { %603 = vmatprep.subr.mxu1 %v640_v18 }
  0xee   : > { %604 = vmatpush3.msra.mxu1 %v391_v32 }
  0xef   : > { %605 = vmatprep.subr.mxu1 %v640_v18 }
  0xf0   : > { %606 = vmatpush3.msra.mxu1 %v390_v33 }
  0xf1   : > { %607 = vmatprep.subr.mxu1 %v640_v18 }
  0xf2   : > { %608 = vmatpush3.msra.mxu1 %v389_v34 }
  0xf3   : > { %610 = vmatmul.mubr.msk.f32.vlgmr.msra.gmra.mxu1 %vm396_vm11, %v393_v35 }
 0x1b3   : > { %v470_v37 = vpop.f32.mrf.mxu1 }
 0x1b4   : > { %v471_v38 = vadd.f32 %v470_v37, %v395_v36 }
 0x1b5   : > { %v611_v39 = vpop.f32.mrf.mxu1 }
 0x1b6   : > { %v559_v40 = vmul.f32 -1.442695, %v471_v38 }
 0x1b8   : > { %626 = vpow2.f32 %v559_v40 }
 0x1c5   : > { %v627_v41 = vpop.eup %626 }
 0x1c6   : > { %v477_v42 = vadd.f32 1.0, %v627_v41 }
 0x1c8   : > { %628 = vrcp.f32 %v477_v42 }
 0x1d5   : > { %v629_v43 = vpop.eup %628 }
 0x1d6   : > { %480 = vst [vmem:[%s218_s23] sm:$0x1] %v629_v43 }
 0x1d7 PF: > { %s16_s20 = sadd.s32 1, %s636_s20  }
 0x1d8   : > { %p13_p4 = scmp.ge.s32.totalorder %s16_s20, 4  }
 0x1da   :  { %15 = sbr.rel (!%p13_p4) target bundleno = 2 (0x2), region = 70 }

</bundles_post_ra>
